<compile_context>
chip_gen: v7x
topology: tpu7x:2x2x1
jax: 0.10.0
libtpu: 0.0.40
codegen_flags: <defaults>
</compile_context>

<pallas_src>
import jax
import jax.numpy as jnp
from jax.experimental import pallas as pl
from jax.experimental.pallas import tpu as pltpu


def _choose_q_tile(nq: int, target: int = 256) -> int:
    """Largest divisor of nq that is a multiple of 8 and <= target; else nq."""
    if nq <= target or nq % 8 != 0:
        return nq
    for t in range(target - (target % 8), 7, -8):
        if nq % t == 0:
            return t
    return nq


# ----------------------------------------------------------------------------
# Pallas kernel: one (batch element, query tile) per grid step.
# ----------------------------------------------------------------------------
def mha_kernel(xq_ref, xk_ref, xv_ref, wq_ref, wk_ref, wv_ref, wo_ref,
               out_ref, *att_refs):
    H = wq_ref.shape[0]
    E = wo_ref.shape[2]
    TQ = xq_ref.shape[1]

    # Activations cast to bf16 right before the MXU dots.
    xq = xq_ref[0].astype(jnp.bfloat16)            # (TQ, query_size)
    xk = xk_ref[0].astype(jnp.bfloat16)            # (Nk, key_size)
    xv = xv_ref[0].astype(jnp.bfloat16)            # (Nk, value_size)

    acc = jnp.zeros((TQ, E), jnp.float32)
    for h in range(H):                             # H is small & static: unrolled
        # Per-head projections, f32 MXU accumulation.
        # (wq already carries the 1/sqrt(emb_size) scaling.)
        q = jnp.dot(xq, wq_ref[h], preferred_element_type=jnp.float32)   # (TQ, D)
        k = jnp.dot(xk, wk_ref[h], preferred_element_type=jnp.float32)   # (Nk, D)
        v = jnp.dot(xv, wv_ref[h], preferred_element_type=jnp.float32)   # (Nk, D)

        # Attention scores (TQ, Nk); softmax over keys in f32.
        energy = jnp.einsum('qd,kd->qk',
                            q.astype(jnp.bfloat16), k.astype(jnp.bfloat16),
                            preferred_element_type=jnp.float32)
        m = jnp.max(energy, axis=-1, keepdims=True)
        e = jnp.exp(energy - m)
        att = e * pl.reciprocal(jnp.sum(e, axis=-1, keepdims=True), approx=True)

        if att_refs:                               # optional attention-weights output
            att_refs[0][0, h] = att

        # TODO(synk): optional boolean `mask` (energy masking) is not implemented.
        # att_drop / projection dropout are identity at inference.

        # att @ V, then fused head-merge + output projection: acc += ov_h @ Wo_h.
        ov = jnp.dot(att.astype(jnp.bfloat16), v.astype(jnp.bfloat16),
                     preferred_element_type=jnp.float32)                  # (TQ, D)
        acc = acc + jnp.dot(ov.astype(jnp.bfloat16), wo_ref[h],
                            preferred_element_type=jnp.float32)           # (TQ, E)

    out_ref[0] = acc.astype(out_ref.dtype)


# ----------------------------------------------------------------------------
# Wrapper
# ----------------------------------------------------------------------------
def multi_head_attention(query, key, value, wq, wk, wv, wo, num_heads,
                         *, return_attention=True, q_tile=None):
    B, Nq, QS = query.shape
    _, Nk, KS = key.shape
    _, _, VS = value.shape
    E = wq.shape[1]
    assert E % num_heads == 0
    D = E // num_heads
    scaling = float(E) ** 0.5           # module uses emb_size ** (1/2), not head_dim

    tq = q_tile if q_tile is not None else _choose_q_tile(Nq)
    assert Nq % tq == 0

    # One-time weight prep in plain JAX: fold scaling into wq, split heads,
    # cast to bf16 (halves weight HBM traffic / VMEM residency).
    wq_r = (wq / scaling).reshape(QS, num_heads, D).transpose(1, 0, 2).astype(jnp.bfloat16)
    wk_r = wk.reshape(KS, num_heads, D).transpose(1, 0, 2).astype(jnp.bfloat16)
    wv_r = wv.reshape(VS, num_heads, D).transpose(1, 0, 2).astype(jnp.bfloat16)
    wo_r = wo.reshape(num_heads, D, E).astype(jnp.bfloat16)

    grid = (B, Nq // tq)
    in_specs = [
        pl.BlockSpec((1, tq, QS), lambda b, qi: (b, qi, 0)),
        pl.BlockSpec((1, Nk, KS), lambda b, qi: (b, 0, 0)),
        pl.BlockSpec((1, Nk, VS), lambda b, qi: (b, 0, 0)),
        # Constant index_maps -> weights stay VMEM-resident across the whole grid.
        pl.BlockSpec((num_heads, QS, D), lambda b, qi: (0, 0, 0)),
        pl.BlockSpec((num_heads, KS, D), lambda b, qi: (0, 0, 0)),
        pl.BlockSpec((num_heads, VS, D), lambda b, qi: (0, 0, 0)),
        pl.BlockSpec((num_heads, D, E), lambda b, qi: (0, 0, 0)),
    ]
    out_spec_y = pl.BlockSpec((1, tq, E), lambda b, qi: (b, qi, 0))
    shape_y = jax.ShapeDtypeStruct((B, Nq, E), jnp.float32)

    if return_attention:
        out_specs = (out_spec_y,
                     pl.BlockSpec((1, num_heads, tq, Nk),
                                  lambda b, qi: (b, 0, qi, 0)))
        out_shape = (shape_y,
                     jax.ShapeDtypeStruct((B, num_heads, Nq, Nk), jnp.float32))
    else:
        out_specs = out_spec_y
        out_shape = shape_y

    return pl.pallas_call(
        mha_kernel,
        grid=grid,
        in_specs=in_specs,
        out_specs=out_specs,
        out_shape=out_shape,
        compiler_params=pltpu.CompilerParams(
            dimension_semantics=("parallel", "parallel")),
    )(query, key, value, wq_r, wk_r, wv_r, wo_r)


# ----------------------------------------------------------------------------
# Pure-JAX f32 reference (mirrors the PyTorch module, mask=None, dropout=id)
# ----------------------------------------------------------------------------
def ref_mha(query, key, value, wq, wk, wv, wo, num_heads):
    B, Nq, _ = query.shape
    Nk = key.shape[1]
    E = wq.shape[1]
    D = E // num_heads
    q = query @ wq
    k = key @ wk
    v = value @ wv
    qh = q.reshape(B, Nq, num_heads, D).transpose(0, 2, 1, 3)
    kh = k.reshape(B, Nk, num_heads, D).transpose(0, 2, 1, 3)
    vh = v.reshape(B, Nk, num_heads, D).transpose(0, 2, 1, 3)
    energy = jnp.einsum('bhqd,bhkd->bhqk', qh, kh)
    att = jax.nn.softmax(energy / (float(E) ** 0.5), axis=-1)
    out = jnp.einsum('bhqk,bhkd->bhqd', att, vh)
    out = out.transpose(0, 2, 1, 3).reshape(B, Nq, E)
    return out @ wo, att


# ----------------------------------------------------------------------------
# Self-test
# ----------------------------------------------------------------------------
if __name__ == "__main__":
    B, Nq, Nkv = 2, 8, 16
    EMB, HEADS = 32, 4
    QS = KS = VS = EMB

    rng = jax.random.PRNGKey(0)
    kq, kk, kv, k1, k2, k3, k4 = jax.random.split(rng, 7)
    query = jax.random.normal(kq, (B, Nq, QS), jnp.float32)
    key_t = jax.random.normal(kk, (B, Nkv, KS), jnp.float32)
    value = jax.random.normal(kv, (B, Nkv, VS), jnp.float32)
    wq = 0.05 * jax.random.normal(k1, (QS, EMB), jnp.float32)
    wk = 0.05 * jax.random.normal(k2, (KS, EMB), jnp.float32)
    wv = 0.05 * jax.random.normal(k3, (VS, EMB), jnp.float32)
    wo = 0.05 * jax.random.normal(k4, (EMB, EMB), jnp.float32)

    out, att = multi_head_attention(query, key_t, value, wq, wk, wv, wo, HEADS,
                                    return_attention=True)
    out = jax.block_until_ready(out)
    att = jax.block_until_ready(att)

    ref_out, ref_att = ref_mha(query, key_t, value, wq, wk, wv, wo, HEADS)

    assert out.shape == (B, Nq, EMB)
    assert att.shape == (B, HEADS, Nq, Nkv)
    assert jnp.allclose(out, ref_out, atol=3e-2, rtol=3e-2), \
        float(jnp.max(jnp.abs(out - ref_out)))
    assert jnp.allclose(att, ref_att, atol=2e-2, rtol=2e-2), \
        float(jnp.max(jnp.abs(att - ref_att)))

    # Optional-attention path (skips the (B,H,Nq,Nk) HBM writeback).
    out_noatt = multi_head_attention(query, key_t, value, wq, wk, wv, wo, HEADS,
                                     return_attention=False)
    out_noatt = jax.block_until_ready(out_noatt)
    assert jnp.allclose(out_noatt, out, atol=1e-5, rtol=1e-5)

    print("KERNEL_OK")
</pallas_src>

<mosaic_0001>
module attributes {stable_mosaic.version = 11 : i64} {
  func.func @mha_kernel(%arg0: i32, %arg1: i32, %arg2: memref<1x8x32xf32, #tpu.memory_space<vmem>>, %arg3: memref<1x16x32xf32, #tpu.memory_space<vmem>>, %arg4: memref<1x16x32xf32, #tpu.memory_space<vmem>>, %arg5: memref<4x32x8xbf16, #tpu.memory_space<vmem>>, %arg6: memref<4x32x8xbf16, #tpu.memory_space<vmem>>, %arg7: memref<4x32x8xbf16, #tpu.memory_space<vmem>>, %arg8: memref<4x8x32xbf16, #tpu.memory_space<vmem>>, %arg9: memref<1x8x32xf32, #tpu.memory_space<vmem>>, %arg10: memref<1x4x8x16xf32, #tpu.memory_space<vmem>>) attributes {dimension_semantics = [#tpu.dimension_semantics<parallel>, #tpu.dimension_semantics<parallel>], iteration_bounds = array<i64: 2, 1>, scalar_prefetch = 0 : i64, scratch_operands = 0 : i64, tpu.core_type = #tpu.core_type<tc>, window_params = [{transform_indices = @transform_0, window_bounds = array<i64: 1, 8, 32>}, {transform_indices = @transform_1, window_bounds = array<i64: 1, 16, 32>}, {transform_indices = @transform_2, window_bounds = array<i64: 1, 16, 32>}, {pipeline_mode = #tpu.pipeline_mode<synchronous>, transform_indices = @transform_3, window_bounds = array<i64: 4, 32, 8>}, {pipeline_mode = #tpu.pipeline_mode<synchronous>, transform_indices = @transform_4, window_bounds = array<i64: 4, 32, 8>}, {pipeline_mode = #tpu.pipeline_mode<synchronous>, transform_indices = @transform_5, window_bounds = array<i64: 4, 32, 8>}, {pipeline_mode = #tpu.pipeline_mode<synchronous>, transform_indices = @transform_6, window_bounds = array<i64: 4, 8, 32>}, {transform_indices = @transform_7, window_bounds = array<i64: 1, 8, 32>}, {transform_indices = @transform_8, window_bounds = array<i64: 1, 4, 8, 16>}]} {
    %c0 = arith.constant 0 : index
    %c0_0 = arith.constant 0 : index
    %c0_1 = arith.constant 0 : index
    %0 = vector.load %arg2[%c0, %c0_0, %c0_1] : memref<1x8x32xf32, #tpu.memory_space<vmem>>, vector<1x8x32xf32>
    %1 = vector.shape_cast %0 : vector<1x8x32xf32> to vector<8x32xf32>
    %2 = arith.truncf %1 : vector<8x32xf32> to vector<8x32xbf16>
    %c0_2 = arith.constant 0 : index
    %c0_3 = arith.constant 0 : index
    %c0_4 = arith.constant 0 : index
    %3 = vector.load %arg3[%c0_2, %c0_3, %c0_4] : memref<1x16x32xf32, #tpu.memory_space<vmem>>, vector<1x16x32xf32>
    %4 = vector.shape_cast %3 : vector<1x16x32xf32> to vector<16x32xf32>
    %5 = arith.truncf %4 : vector<16x32xf32> to vector<16x32xbf16>
    %c0_5 = arith.constant 0 : index
    %c0_6 = arith.constant 0 : index
    %c0_7 = arith.constant 0 : index
    %6 = vector.load %arg4[%c0_5, %c0_6, %c0_7] : memref<1x16x32xf32, #tpu.memory_space<vmem>>, vector<1x16x32xf32>
    %7 = vector.shape_cast %6 : vector<1x16x32xf32> to vector<16x32xf32>
    %8 = arith.truncf %7 : vector<16x32xf32> to vector<16x32xbf16>
    %cst = arith.constant 0.000000e+00 : f32
    %9 = vector.broadcast %cst : f32 to vector<8x32xf32>
    %c0_8 = arith.constant 0 : index
    %c0_9 = arith.constant 0 : index
    %c0_10 = arith.constant 0 : index
    %10 = vector.load %arg5[%c0_8, %c0_9, %c0_10] : memref<4x32x8xbf16, #tpu.memory_space<vmem>>, vector<1x32x8xbf16>
    %11 = vector.shape_cast %10 : vector<1x32x8xbf16> to vector<32x8xbf16>
    %cst_11 = arith.constant dense<0.000000e+00> : vector<8x8xf32>
    %12 = tpu.matmul %2, %11, %cst_11 {dimension_numbers = #tpu.dot_dimension_numbers<[1], [0], [0], [1], [0, 0, 1, 1], [], []>} : vector<8x32xbf16>, vector<32x8xbf16>, vector<8x8xf32> -> vector<8x8xf32>
    %c0_12 = arith.constant 0 : index
    %c0_13 = arith.constant 0 : index
    %c0_14 = arith.constant 0 : index
    %13 = vector.load %arg6[%c0_12, %c0_13, %c0_14] : memref<4x32x8xbf16, #tpu.memory_space<vmem>>, vector<1x32x8xbf16>
    %14 = vector.shape_cast %13 : vector<1x32x8xbf16> to vector<32x8xbf16>
    %cst_15 = arith.constant dense<0.000000e+00> : vector<16x8xf32>
    %15 = tpu.matmul %5, %14, %cst_15 {dimension_numbers = #tpu.dot_dimension_numbers<[1], [0], [0], [1], [0, 0, 1, 1], [], []>} : vector<16x32xbf16>, vector<32x8xbf16>, vector<16x8xf32> -> vector<16x8xf32>
    %c0_16 = arith.constant 0 : index
    %c0_17 = arith.constant 0 : index
    %c0_18 = arith.constant 0 : index
    %16 = vector.load %arg7[%c0_16, %c0_17, %c0_18] : memref<4x32x8xbf16, #tpu.memory_space<vmem>>, vector<1x32x8xbf16>
    %17 = vector.shape_cast %16 : vector<1x32x8xbf16> to vector<32x8xbf16>
    %cst_19 = arith.constant dense<0.000000e+00> : vector<16x8xf32>
    %18 = tpu.matmul %8, %17, %cst_19 {dimension_numbers = #tpu.dot_dimension_numbers<[1], [0], [0], [1], [0, 0, 1, 1], [], []>} : vector<16x32xbf16>, vector<32x8xbf16>, vector<16x8xf32> -> vector<16x8xf32>
    %19 = arith.truncf %12 : vector<8x8xf32> to vector<8x8xbf16>
    %20 = arith.truncf %15 : vector<16x8xf32> to vector<16x8xbf16>
    "tpu.trace_start"() <{level = 10 : i32, message = "qd,kd->qk"}> : () -> ()
    %cst_20 = arith.constant dense<0.000000e+00> : vector<8x16xf32>
    %21 = tpu.matmul %19, %20, %cst_20 {dimension_numbers = #tpu.dot_dimension_numbers<[1], [1], [0], [0], [0, 0, 1, 0], [], []>} : vector<8x8xbf16>, vector<16x8xbf16>, vector<8x16xf32> -> vector<8x16xf32>
    "tpu.trace_stop"() : () -> ()
    %cst_21 = arith.constant dense<0xFF800000> : vector<8xf32>
    %22 = vector.multi_reduction <maximumf>, %21, %cst_21 [1] : vector<8x16xf32> to vector<8xf32>
    %23 = vector.shape_cast %22 : vector<8xf32> to vector<8x1xf32>
    %24 = vector.broadcast %23 : vector<8x1xf32> to vector<8x16xf32>
    %25 = arith.subf %21, %24 : vector<8x16xf32>
    %26 = math.exp %25 : vector<8x16xf32>
    %cst_22 = arith.constant dense<0.000000e+00> : vector<8xf32>
    %27 = vector.multi_reduction <add>, %26, %cst_22 [1] : vector<8x16xf32> to vector<8xf32>
    %28 = vector.shape_cast %27 : vector<8xf32> to vector<8x1xf32>
    %29 = tpu.reciprocal %28 {approx = true} : vector<8x1xf32> -> vector<8x1xf32>
    %30 = vector.broadcast %29 : vector<8x1xf32> to vector<8x16xf32>
    %31 = arith.mulf %26, %30 : vector<8x16xf32>
    %c0_23 = arith.constant 0 : index
    %c0_24 = arith.constant 0 : index
    %c0_25 = arith.constant 0 : index
    %c0_26 = arith.constant 0 : index
    %32 = vector.load %arg10[%c0_23, %c0_24, %c0_25, %c0_26] : memref<1x4x8x16xf32, #tpu.memory_space<vmem>>, vector<1x1x8x16xf32>
    %33 = vector.shape_cast %32 : vector<1x1x8x16xf32> to vector<8x16xf32>
    %34 = vector.shape_cast %31 : vector<8x16xf32> to vector<1x1x8x16xf32>
    tpu.vector_store %arg10[%c0_23, %c0_24, %c0_25, %c0_26], %34 {strides = array<i32>} : memref<1x4x8x16xf32, #tpu.memory_space<vmem>>, vector<1x1x8x16xf32>,
    %35 = arith.truncf %31 : vector<8x16xf32> to vector<8x16xbf16>
    %36 = arith.truncf %18 : vector<16x8xf32> to vector<16x8xbf16>
    %cst_27 = arith.constant dense<0.000000e+00> : vector<8x8xf32>
    %37 = tpu.matmul %35, %36, %cst_27 {dimension_numbers = #tpu.dot_dimension_numbers<[1], [0], [0], [1], [0, 0, 1, 1], [], []>} : vector<8x16xbf16>, vector<16x8xbf16>, vector<8x8xf32> -> vector<8x8xf32>
    %38 = arith.truncf %37 : vector<8x8xf32> to vector<8x8xbf16>
    %c0_28 = arith.constant 0 : index
    %c0_29 = arith.constant 0 : index
    %c0_30 = arith.constant 0 : index
    %39 = vector.load %arg8[%c0_28, %c0_29, %c0_30] : memref<4x8x32xbf16, #tpu.memory_space<vmem>>, vector<1x8x32xbf16>
    %40 = vector.shape_cast %39 : vector<1x8x32xbf16> to vector<8x32xbf16>
    %cst_31 = arith.constant dense<0.000000e+00> : vector<8x32xf32>
    %41 = tpu.matmul %38, %40, %cst_31 {dimension_numbers = #tpu.dot_dimension_numbers<[1], [0], [0], [1], [0, 0, 1, 1], [], []>} : vector<8x8xbf16>, vector<8x32xbf16>, vector<8x32xf32> -> vector<8x32xf32>
    %42 = arith.addf %9, %41 : vector<8x32xf32>
    %c1 = arith.constant 1 : index
    %c0_32 = arith.constant 0 : index
    %c0_33 = arith.constant 0 : index
    %43 = vector.load %arg5[%c1, %c0_32, %c0_33] : memref<4x32x8xbf16, #tpu.memory_space<vmem>>, vector<1x32x8xbf16>
    %44 = vector.shape_cast %43 : vector<1x32x8xbf16> to vector<32x8xbf16>
    %cst_34 = arith.constant dense<0.000000e+00> : vector<8x8xf32>
    %45 = tpu.matmul %2, %44, %cst_34 {dimension_numbers = #tpu.dot_dimension_numbers<[1], [0], [0], [1], [0, 0, 1, 1], [], []>} : vector<8x32xbf16>, vector<32x8xbf16>, vector<8x8xf32> -> vector<8x8xf32>
    %c1_35 = arith.constant 1 : index
    %c0_36 = arith.constant 0 : index
    %c0_37 = arith.constant 0 : index
    %46 = vector.load %arg6[%c1_35, %c0_36, %c0_37] : memref<4x32x8xbf16, #tpu.memory_space<vmem>>, vector<1x32x8xbf16>
    %47 = vector.shape_cast %46 : vector<1x32x8xbf16> to vector<32x8xbf16>
    %cst_38 = arith.constant dense<0.000000e+00> : vector<16x8xf32>
    %48 = tpu.matmul %5, %47, %cst_38 {dimension_numbers = #tpu.dot_dimension_numbers<[1], [0], [0], [1], [0, 0, 1, 1], [], []>} : vector<16x32xbf16>, vector<32x8xbf16>, vector<16x8xf32> -> vector<16x8xf32>
    %c1_39 = arith.constant 1 : index
    %c0_40 = arith.constant 0 : index
    %c0_41 = arith.constant 0 : index
    %49 = vector.load %arg7[%c1_39, %c0_40, %c0_41] : memref<4x32x8xbf16, #tpu.memory_space<vmem>>, vector<1x32x8xbf16>
    %50 = vector.shape_cast %49 : vector<1x32x8xbf16> to vector<32x8xbf16>
    %cst_42 = arith.constant dense<0.000000e+00> : vector<16x8xf32>
    %51 = tpu.matmul %8, %50, %cst_42 {dimension_numbers = #tpu.dot_dimension_numbers<[1], [0], [0], [1], [0, 0, 1, 1], [], []>} : vector<16x32xbf16>, vector<32x8xbf16>, vector<16x8xf32> -> vector<16x8xf32>
    %52 = arith.truncf %45 : vector<8x8xf32> to vector<8x8xbf16>
    %53 = arith.truncf %48 : vector<16x8xf32> to vector<16x8xbf16>
    "tpu.trace_start"() <{level = 10 : i32, message = "qd,kd->qk"}> : () -> ()
    %cst_43 = arith.constant dense<0.000000e+00> : vector<8x16xf32>
    %54 = tpu.matmul %52, %53, %cst_43 {dimension_numbers = #tpu.dot_dimension_numbers<[1], [1], [0], [0], [0, 0, 1, 0], [], []>} : vector<8x8xbf16>, vector<16x8xbf16>, vector<8x16xf32> -> vector<8x16xf32>
    "tpu.trace_stop"() : () -> ()
    %cst_44 = arith.constant dense<0xFF800000> : vector<8xf32>
    %55 = vector.multi_reduction <maximumf>, %54, %cst_44 [1] : vector<8x16xf32> to vector<8xf32>
    %56 = vector.shape_cast %55 : vector<8xf32> to vector<8x1xf32>
    %57 = vector.broadcast %56 : vector<8x1xf32> to vector<8x16xf32>
    %58 = arith.subf %54, %57 : vector<8x16xf32>
    %59 = math.exp %58 : vector<8x16xf32>
    %cst_45 = arith.constant dense<0.000000e+00> : vector<8xf32>
    %60 = vector.multi_reduction <add>, %59, %cst_45 [1] : vector<8x16xf32> to vector<8xf32>
    %61 = vector.shape_cast %60 : vector<8xf32> to vector<8x1xf32>
    %62 = tpu.reciprocal %61 {approx = true} : vector<8x1xf32> -> vector<8x1xf32>
    %63 = vector.broadcast %62 : vector<8x1xf32> to vector<8x16xf32>
    %64 = arith.mulf %59, %63 : vector<8x16xf32>
    %c0_46 = arith.constant 0 : index
    %c1_47 = arith.constant 1 : index
    %c0_48 = arith.constant 0 : index
    %c0_49 = arith.constant 0 : index
    %65 = vector.load %arg10[%c0_46, %c1_47, %c0_48, %c0_49] : memref<1x4x8x16xf32, #tpu.memory_space<vmem>>, vector<1x1x8x16xf32>
    %66 = vector.shape_cast %65 : vector<1x1x8x16xf32> to vector<8x16xf32>
    %67 = vector.shape_cast %64 : vector<8x16xf32> to vector<1x1x8x16xf32>
    tpu.vector_store %arg10[%c0_46, %c1_47, %c0_48, %c0_49], %67 {strides = array<i32>} : memref<1x4x8x16xf32, #tpu.memory_space<vmem>>, vector<1x1x8x16xf32>,
    %68 = arith.truncf %64 : vector<8x16xf32> to vector<8x16xbf16>
    %69 = arith.truncf %51 : vector<16x8xf32> to vector<16x8xbf16>
    %cst_50 = arith.constant dense<0.000000e+00> : vector<8x8xf32>
    %70 = tpu.matmul %68, %69, %cst_50 {dimension_numbers = #tpu.dot_dimension_numbers<[1], [0], [0], [1], [0, 0, 1, 1], [], []>} : vector<8x16xbf16>, vector<16x8xbf16>, vector<8x8xf32> -> vector<8x8xf32>
    %71 = arith.truncf %70 : vector<8x8xf32> to vector<8x8xbf16>
    %c1_51 = arith.constant 1 : index
    %c0_52 = arith.constant 0 : index
    %c0_53 = arith.constant 0 : index
    %72 = vector.load %arg8[%c1_51, %c0_52, %c0_53] : memref<4x8x32xbf16, #tpu.memory_space<vmem>>, vector<1x8x32xbf16>
    %73 = vector.shape_cast %72 : vector<1x8x32xbf16> to vector<8x32xbf16>
    %cst_54 = arith.constant dense<0.000000e+00> : vector<8x32xf32>
    %74 = tpu.matmul %71, %73, %cst_54 {dimension_numbers = #tpu.dot_dimension_numbers<[1], [0], [0], [1], [0, 0, 1, 1], [], []>} : vector<8x8xbf16>, vector<8x32xbf16>, vector<8x32xf32> -> vector<8x32xf32>
    %75 = arith.addf %42, %74 : vector<8x32xf32>
    %c2 = arith.constant 2 : index
    %c0_55 = arith.constant 0 : index
    %c0_56 = arith.constant 0 : index
    %76 = vector.load %arg5[%c2, %c0_55, %c0_56] : memref<4x32x8xbf16, #tpu.memory_space<vmem>>, vector<1x32x8xbf16>
    %77 = vector.shape_cast %76 : vector<1x32x8xbf16> to vector<32x8xbf16>
    %cst_57 = arith.constant dense<0.000000e+00> : vector<8x8xf32>
    %78 = tpu.matmul %2, %77, %cst_57 {dimension_numbers = #tpu.dot_dimension_numbers<[1], [0], [0], [1], [0, 0, 1, 1], [], []>} : vector<8x32xbf16>, vector<32x8xbf16>, vector<8x8xf32> -> vector<8x8xf32>
    %c2_58 = arith.constant 2 : index
    %c0_59 = arith.constant 0 : index
    %c0_60 = arith.constant 0 : index
    %79 = vector.load %arg6[%c2_58, %c0_59, %c0_60] : memref<4x32x8xbf16, #tpu.memory_space<vmem>>, vector<1x32x8xbf16>
    %80 = vector.shape_cast %79 : vector<1x32x8xbf16> to vector<32x8xbf16>
    %cst_61 = arith.constant dense<0.000000e+00> : vector<16x8xf32>
    %81 = tpu.matmul %5, %80, %cst_61 {dimension_numbers = #tpu.dot_dimension_numbers<[1], [0], [0], [1], [0, 0, 1, 1], [], []>} : vector<16x32xbf16>, vector<32x8xbf16>, vector<16x8xf32> -> vector<16x8xf32>
    %c2_62 = arith.constant 2 : index
    %c0_63 = arith.constant 0 : index
    %c0_64 = arith.constant 0 : index
    %82 = vector.load %arg7[%c2_62, %c0_63, %c0_64] : memref<4x32x8xbf16, #tpu.memory_space<vmem>>, vector<1x32x8xbf16>
    %83 = vector.shape_cast %82 : vector<1x32x8xbf16> to vector<32x8xbf16>
    %cst_65 = arith.constant dense<0.000000e+00> : vector<16x8xf32>
    %84 = tpu.matmul %8, %83, %cst_65 {dimension_numbers = #tpu.dot_dimension_numbers<[1], [0], [0], [1], [0, 0, 1, 1], [], []>} : vector<16x32xbf16>, vector<32x8xbf16>, vector<16x8xf32> -> vector<16x8xf32>
    %85 = arith.truncf %78 : vector<8x8xf32> to vector<8x8xbf16>
    %86 = arith.truncf %81 : vector<16x8xf32> to vector<16x8xbf16>
    "tpu.trace_start"() <{level = 10 : i32, message = "qd,kd->qk"}> : () -> ()
    %cst_66 = arith.constant dense<0.000000e+00> : vector<8x16xf32>
    %87 = tpu.matmul %85, %86, %cst_66 {dimension_numbers = #tpu.dot_dimension_numbers<[1], [1], [0], [0], [0, 0, 1, 0], [], []>} : vector<8x8xbf16>, vector<16x8xbf16>, vector<8x16xf32> -> vector<8x16xf32>
    "tpu.trace_stop"() : () -> ()
    %cst_67 = arith.constant dense<0xFF800000> : vector<8xf32>
    %88 = vector.multi_reduction <maximumf>, %87, %cst_67 [1] : vector<8x16xf32> to vector<8xf32>
    %89 = vector.shape_cast %88 : vector<8xf32> to vector<8x1xf32>
    %90 = vector.broadcast %89 : vector<8x1xf32> to vector<8x16xf32>
    %91 = arith.subf %87, %90 : vector<8x16xf32>
    %92 = math.exp %91 : vector<8x16xf32>
    %cst_68 = arith.constant dense<0.000000e+00> : vector<8xf32>
    %93 = vector.multi_reduction <add>, %92, %cst_68 [1] : vector<8x16xf32> to vector<8xf32>
    %94 = vector.shape_cast %93 : vector<8xf32> to vector<8x1xf32>
    %95 = tpu.reciprocal %94 {approx = true} : vector<8x1xf32> -> vector<8x1xf32>
    %96 = vector.broadcast %95 : vector<8x1xf32> to vector<8x16xf32>
    %97 = arith.mulf %92, %96 : vector<8x16xf32>
    %c0_69 = arith.constant 0 : index
    %c2_70 = arith.constant 2 : index
    %c0_71 = arith.constant 0 : index
    %c0_72 = arith.constant 0 : index
    %98 = vector.load %arg10[%c0_69, %c2_70, %c0_71, %c0_72] : memref<1x4x8x16xf32, #tpu.memory_space<vmem>>, vector<1x1x8x16xf32>
    %99 = vector.shape_cast %98 : vector<1x1x8x16xf32> to vector<8x16xf32>
    %100 = vector.shape_cast %97 : vector<8x16xf32> to vector<1x1x8x16xf32>
    tpu.vector_store %arg10[%c0_69, %c2_70, %c0_71, %c0_72], %100 {strides = array<i32>} : memref<1x4x8x16xf32, #tpu.memory_space<vmem>>, vector<1x1x8x16xf32>,
    %101 = arith.truncf %97 : vector<8x16xf32> to vector<8x16xbf16>
    %102 = arith.truncf %84 : vector<16x8xf32> to vector<16x8xbf16>
    %cst_73 = arith.constant dense<0.000000e+00> : vector<8x8xf32>
    %103 = tpu.matmul %101, %102, %cst_73 {dimension_numbers = #tpu.dot_dimension_numbers<[1], [0], [0], [1], [0, 0, 1, 1], [], []>} : vector<8x16xbf16>, vector<16x8xbf16>, vector<8x8xf32> -> vector<8x8xf32>
    %104 = arith.truncf %103 : vector<8x8xf32> to vector<8x8xbf16>
    %c2_74 = arith.constant 2 : index
    %c0_75 = arith.constant 0 : index
    %c0_76 = arith.constant 0 : index
    %105 = vector.load %arg8[%c2_74, %c0_75, %c0_76] : memref<4x8x32xbf16, #tpu.memory_space<vmem>>, vector<1x8x32xbf16>
    %106 = vector.shape_cast %105 : vector<1x8x32xbf16> to vector<8x32xbf16>
    %cst_77 = arith.constant dense<0.000000e+00> : vector<8x32xf32>
    %107 = tpu.matmul %104, %106, %cst_77 {dimension_numbers = #tpu.dot_dimension_numbers<[1], [0], [0], [1], [0, 0, 1, 1], [], []>} : vector<8x8xbf16>, vector<8x32xbf16>, vector<8x32xf32> -> vector<8x32xf32>
    %108 = arith.addf %75, %107 : vector<8x32xf32>
    %c3 = arith.constant 3 : index
    %c0_78 = arith.constant 0 : index
    %c0_79 = arith.constant 0 : index
    %109 = vector.load %arg5[%c3, %c0_78, %c0_79] : memref<4x32x8xbf16, #tpu.memory_space<vmem>>, vector<1x32x8xbf16>
    %110 = vector.shape_cast %109 : vector<1x32x8xbf16> to vector<32x8xbf16>
    %cst_80 = arith.constant dense<0.000000e+00> : vector<8x8xf32>
    %111 = tpu.matmul %2, %110, %cst_80 {dimension_numbers = #tpu.dot_dimension_numbers<[1], [0], [0], [1], [0, 0, 1, 1], [], []>} : vector<8x32xbf16>, vector<32x8xbf16>, vector<8x8xf32> -> vector<8x8xf32>
    %c3_81 = arith.constant 3 : index
    %c0_82 = arith.constant 0 : index
    %c0_83 = arith.constant 0 : index
    %112 = vector.load %arg6[%c3_81, %c0_82, %c0_83] : memref<4x32x8xbf16, #tpu.memory_space<vmem>>, vector<1x32x8xbf16>
    %113 = vector.shape_cast %112 : vector<1x32x8xbf16> to vector<32x8xbf16>
    %cst_84 = arith.constant dense<0.000000e+00> : vector<16x8xf32>
    %114 = tpu.matmul %5, %113, %cst_84 {dimension_numbers = #tpu.dot_dimension_numbers<[1], [0], [0], [1], [0, 0, 1, 1], [], []>} : vector<16x32xbf16>, vector<32x8xbf16>, vector<16x8xf32> -> vector<16x8xf32>
    %c3_85 = arith.constant 3 : index
    %c0_86 = arith.constant 0 : index
    %c0_87 = arith.constant 0 : index
    %115 = vector.load %arg7[%c3_85, %c0_86, %c0_87] : memref<4x32x8xbf16, #tpu.memory_space<vmem>>, vector<1x32x8xbf16>
    %116 = vector.shape_cast %115 : vector<1x32x8xbf16> to vector<32x8xbf16>
    %cst_88 = arith.constant dense<0.000000e+00> : vector<16x8xf32>
    %117 = tpu.matmul %8, %116, %cst_88 {dimension_numbers = #tpu.dot_dimension_numbers<[1], [0], [0], [1], [0, 0, 1, 1], [], []>} : vector<16x32xbf16>, vector<32x8xbf16>, vector<16x8xf32> -> vector<16x8xf32>
    %118 = arith.truncf %111 : vector<8x8xf32> to vector<8x8xbf16>
    %119 = arith.truncf %114 : vector<16x8xf32> to vector<16x8xbf16>
    "tpu.trace_start"() <{level = 10 : i32, message = "qd,kd->qk"}> : () -> ()
    %cst_89 = arith.constant dense<0.000000e+00> : vector<8x16xf32>
    %120 = tpu.matmul %118, %119, %cst_89 {dimension_numbers = #tpu.dot_dimension_numbers<[1], [1], [0], [0], [0, 0, 1, 0], [], []>} : vector<8x8xbf16>, vector<16x8xbf16>, vector<8x16xf32> -> vector<8x16xf32>
    "tpu.trace_stop"() : () -> ()
    %cst_90 = arith.constant dense<0xFF800000> : vector<8xf32>
    %121 = vector.multi_reduction <maximumf>, %120, %cst_90 [1] : vector<8x16xf32> to vector<8xf32>
    %122 = vector.shape_cast %121 : vector<8xf32> to vector<8x1xf32>
    %123 = vector.broadcast %122 : vector<8x1xf32> to vector<8x16xf32>
    %124 = arith.subf %120, %123 : vector<8x16xf32>
    %125 = math.exp %124 : vector<8x16xf32>
    %cst_91 = arith.constant dense<0.000000e+00> : vector<8xf32>
    %126 = vector.multi_reduction <add>, %125, %cst_91 [1] : vector<8x16xf32> to vector<8xf32>
    %127 = vector.shape_cast %126 : vector<8xf32> to vector<8x1xf32>
    %128 = tpu.reciprocal %127 {approx = true} : vector<8x1xf32> -> vector<8x1xf32>
    %129 = vector.broadcast %128 : vector<8x1xf32> to vector<8x16xf32>
    %130 = arith.mulf %125, %129 : vector<8x16xf32>
    %c0_92 = arith.constant 0 : index
    %c3_93 = arith.constant 3 : index
    %c0_94 = arith.constant 0 : index
    %c0_95 = arith.constant 0 : index
    %131 = vector.load %arg10[%c0_92, %c3_93, %c0_94, %c0_95] : memref<1x4x8x16xf32, #tpu.memory_space<vmem>>, vector<1x1x8x16xf32>
    %132 = vector.shape_cast %131 : vector<1x1x8x16xf32> to vector<8x16xf32>
    %133 = vector.shape_cast %130 : vector<8x16xf32> to vector<1x1x8x16xf32>
    tpu.vector_store %arg10[%c0_92, %c3_93, %c0_94, %c0_95], %133 {strides = array<i32>} : memref<1x4x8x16xf32, #tpu.memory_space<vmem>>, vector<1x1x8x16xf32>,
    %134 = arith.truncf %130 : vector<8x16xf32> to vector<8x16xbf16>
    %135 = arith.truncf %117 : vector<16x8xf32> to vector<16x8xbf16>
    %cst_96 = arith.constant dense<0.000000e+00> : vector<8x8xf32>
    %136 = tpu.matmul %134, %135, %cst_96 {dimension_numbers = #tpu.dot_dimension_numbers<[1], [0], [0], [1], [0, 0, 1, 1], [], []>} : vector<8x16xbf16>, vector<16x8xbf16>, vector<8x8xf32> -> vector<8x8xf32>
    %137 = arith.truncf %136 : vector<8x8xf32> to vector<8x8xbf16>
    %c3_97 = arith.constant 3 : index
    %c0_98 = arith.constant 0 : index
    %c0_99 = arith.constant 0 : index
    %138 = vector.load %arg8[%c3_97, %c0_98, %c0_99] : memref<4x8x32xbf16, #tpu.memory_space<vmem>>, vector<1x8x32xbf16>
    %139 = vector.shape_cast %138 : vector<1x8x32xbf16> to vector<8x32xbf16>
    %cst_100 = arith.constant dense<0.000000e+00> : vector<8x32xf32>
    %140 = tpu.matmul %137, %139, %cst_100 {dimension_numbers = #tpu.dot_dimension_numbers<[1], [0], [0], [1], [0, 0, 1, 1], [], []>} : vector<8x8xbf16>, vector<8x32xbf16>, vector<8x32xf32> -> vector<8x32xf32>
    %141 = arith.addf %108, %140 : vector<8x32xf32>
    %c0_101 = arith.constant 0 : index
    %c0_102 = arith.constant 0 : index
    %c0_103 = arith.constant 0 : index
    %142 = vector.load %arg9[%c0_101, %c0_102, %c0_103] : memref<1x8x32xf32, #tpu.memory_space<vmem>>, vector<1x8x32xf32>
    %143 = vector.shape_cast %142 : vector<1x8x32xf32> to vector<8x32xf32>
    %144 = vector.shape_cast %141 : vector<8x32xf32> to vector<1x8x32xf32>
    tpu.vector_store %arg9[%c0_101, %c0_102, %c0_103], %144 {strides = array<i32>} : memref<1x8x32xf32, #tpu.memory_space<vmem>>, vector<1x8x32xf32>,
    return
  }
  func.func @transform_0(%arg0: i32, %arg1: i32) -> (i32, i32, i32) {
    %c0_i32 = arith.constant 0 : i32
    %c0_i32_0 = arith.constant 0 : i32
    return %arg0, %arg1, %c0_i32 : i32, i32, i32
  }
  func.func @transform_1(%arg0: i32, %arg1: i32) -> (i32, i32, i32) {
    %c0_i32 = arith.constant 0 : i32
    %c0_i32_0 = arith.constant 0 : i32
    %c0_i32_1 = arith.constant 0 : i32
    return %arg0, %c0_i32, %c0_i32_0 : i32, i32, i32
  }
  func.func @transform_2(%arg0: i32, %arg1: i32) -> (i32, i32, i32) {
    %c0_i32 = arith.constant 0 : i32
    %c0_i32_0 = arith.constant 0 : i32
    %c0_i32_1 = arith.constant 0 : i32
    return %arg0, %c0_i32, %c0_i32_0 : i32, i32, i32
  }
  func.func @transform_3(%arg0: i32, %arg1: i32) -> (i32, i32, i32) {
    %c0_i32 = arith.constant 0 : i32
    %c0_i32_0 = arith.constant 0 : i32
    %c0_i32_1 = arith.constant 0 : i32
    %c0_i32_2 = arith.constant 0 : i32
    return %c0_i32, %c0_i32_0, %c0_i32_1 : i32, i32, i32
  }
  func.func @transform_4(%arg0: i32, %arg1: i32) -> (i32, i32, i32) {
    %c0_i32 = arith.constant 0 : i32
    %c0_i32_0 = arith.constant 0 : i32
    %c0_i32_1 = arith.constant 0 : i32
    %c0_i32_2 = arith.constant 0 : i32
    return %c0_i32, %c0_i32_0, %c0_i32_1 : i32, i32, i32
  }
  func.func @transform_5(%arg0: i32, %arg1: i32) -> (i32, i32, i32) {
    %c0_i32 = arith.constant 0 : i32
    %c0_i32_0 = arith.constant 0 : i32
    %c0_i32_1 = arith.constant 0 : i32
    %c0_i32_2 = arith.constant 0 : i32
    return %c0_i32, %c0_i32_0, %c0_i32_1 : i32, i32, i32
  }
  func.func @transform_6(%arg0: i32, %arg1: i32) -> (i32, i32, i32) {
    %c0_i32 = arith.constant 0 : i32
    %c0_i32_0 = arith.constant 0 : i32
    %c0_i32_1 = arith.constant 0 : i32
    %c0_i32_2 = arith.constant 0 : i32
    return %c0_i32, %c0_i32_0, %c0_i32_1 : i32, i32, i32
  }
  func.func @transform_7(%arg0: i32, %arg1: i32) -> (i32, i32, i32) {
    %c0_i32 = arith.constant 0 : i32
    %c0_i32_0 = arith.constant 0 : i32
    return %arg0, %arg1, %c0_i32 : i32, i32, i32
  }
  func.func @transform_8(%arg0: i32, %arg1: i32) -> (i32, i32, i32, i32) {
    %c0_i32 = arith.constant 0 : i32
    %c0_i32_0 = arith.constant 0 : i32
    %c0_i32_1 = arith.constant 0 : i32
    return %arg0, %c0_i32, %arg1, %c0_i32_0 : i32, i32, i32, i32
  }
}

</mosaic_0001>

<bundles_post_ra>
// kernel: tpu_custom_call.1
= control target key start
LH: loop header
LB: loop body
LE: loop exit
PB: predicated region body
PF: predicated region fallthrough
CT: control target
= control target key end

     0   :  { %14 = vsyncpa [#allocation3], 0  ;;  %s2901_s0 = inlined_call_operand.vmem [shape: f32[2,8,32], index: 0, kind: input, shape index: {}]   ;;  %s2902_s1 = inlined_call_operand.vmem [shape: f32[2,16,32], index: 1, kind: input, shape index: {}]   ;;  %s2903_s2 = inlined_call_operand.vmem [shape: f32[2,16,32], index: 2, kind: input, shape index: {}]   ;;  %s2904_s3 = inlined_call_operand.vmem [shape: bf16[4,32,8], index: 3, kind: input, shape index: {}]   ;;  %s2905_s4 = inlined_call_operand.vmem [shape: bf16[4,32,8], index: 4, kind: input, shape index: {}]   ;;  %s2906_s5 = inlined_call_operand.vmem [shape: bf16[4,32,8], index: 5, kind: input, shape index: {}]   ;;  %s2907_s6 = inlined_call_operand.vmem [shape: bf16[4,8,32], index: 6, kind: input, shape index: {}]   ;;  %s2908_s7 = inlined_call_operand.hbm [shape: f32[2,8,32], index: 7, kind: output, shape index: {0}]   ;;  %s2909_s8 = inlined_call_operand.hbm [shape: f32[2,4,8,16], index: 8, kind: output, shape index: {1}]  }
   0x1   :  { %16 = vsyncpa [#allocation3 + $0x1], 0 }
   0x2   :  { %17 = vsyncpa [#allocation5], 0 }
   0x3   :  { %19 = vsyncpa [#allocation5 + $0x1], 0  ;;  %s2496_s27 = smov 0   ;;  %s2498_s28 = smov 0  }
   0x4   :  { %s2500_s29 = smov 0   ;;  %s2502_s30 = smov 0  }
   0x5   :  { %s2504_s9 = smov 0   ;;  %s2506_s10 = smov 0  }
   0x6 LB: > { %s1877_s11 = sadd.s32 4294967295, %s2443_s10   ;;  %s1878_s12 = sadd.s32 4294967294, %s2443_s10   ;;  %s2443_s10 = sphi %s2506_s10, %s25_s10   ;;  %s2439_s9 = sphi %s2504_s9, %s2919_s9   ;;  %s2435_s30 = sphi %s2502_s30, %s2918_s30   ;;  %s2431_s29 = sphi %s2500_s29, %s2917_s29   ;;  %s2427_s28 = sphi %s2498_s28, %s2916_s28   ;;  %s2423_s27 = sphi %s2496_s27, %s2915_s27  }
   0x7   : > { %s37_s13 = sadd.s32 1, %s2439_s9  ;;  %s210_s14 = sadd.s32 1, %s2431_s29 }
   0x8   : > { %p39_p0 = scmp.ge.s32.totalorder %s37_s13, 2  ;;  %p220_p1 = scmp.ne.s32.totalorder %s2431_s29, %s2427_s28 }
   0x9   : > { %p221_p2 = scmp.eq.s32.totalorder %s1877_s11, 1  ;;  %p226_p3 = scmp.ne.s32.totalorder %s2427_s28, %s2423_s27 }
   0xa   : > { %s2921_s13 = smov (%p39_p0, %s37_s13), 0  ;;  %p227_p5 = scmp.eq.s32.totalorder %s1878_s12, 1 }
   0xb   : > { %2911 = sst [smem:[#allocation8_spill]] %s2921_s13  ;;  %p2536_p4 = por %p221_p2, %p220_p1 }
   0xc   : > { %s205_s16 = ssub.s32 %s2439_s9, %s2921_s13  ;;  %p1881_p6 = scmp.ge.s32.totalorder %s2443_s10, 1 }
   0xd   : > { %p208_p7 = scmp.eq.s32.totalorder %s205_s16, 0  ;;  %p2543_p8 = por %p227_p5, %p226_p3 }
   0xe   : > { %p311_p9 = scmp.lt.s32.totalorder %s2443_s10, 3 }
   0xf   : > { %s2549_s18 = scalar_select %p208_p7, %s2431_s29, %s210_s14  }
  0x10   : > { %p312_p10 = pnand %p1881_p6, %p311_p9 }
  0x11   : > { %v2293_v0 = vld [vmem:[%s2904_s3] sm:$0xff] (!%p312_p10)   ;;  %v2445_v1 = vmov (!%p312_p10), 0.0   ;;  %v2294_v2 = vld [vmem:[%s2904_s3 + $0x8] sm:$0xff] (!%p312_p10)   ;;  %vm2446_vm0 = vmmov (!%p312_p10), 0   ;;  %p362_p11 = scmp.lt.s32.totalorder (!%p312_p10), %s2435_s30, 1  ;;  %vm404_vm1 = vcmask (!%p312_p10), 261120  }
  0x12   : > { %315 = sbr.rel (%p312_p10) target bundleno = 3202 (0xc82), region = 48  ;;  %2049 = vmatprep.subr.bf16.mxu1 (!%p312_p10), %v2445_v1  ;;  %2065 = vmatprep.subr.bf16.mxu0 (!%p312_p10), %v2445_v1  ;;  %v2295_v4 = vld [vmem:[%s2905_s4] sm:$0xff] (!%p312_p10)   ;;  %v2296_v6 = vld [vmem:[%s2905_s4 + $0x8] sm:$0xff] (!%p312_p10)   ;;  %vm570_vm2 = vcmask (!%p312_p10), 64512   ;;  %vm617_vm3 = vcmask (!%p312_p10), 130048   ;;  %v2301_v41 = vld [vmem:[%s2904_s3 + $0x10] sm:$0xff] (!%p312_p10)  }
  0x13   : > { %2050 = vmatpush3.bf16.msra.mxu1 (!%p312_p10), %v2293_v0  ;;  %2053 = vmatprep.mubr.msk.bf16.mxu1 (!%p312_p10), %vm2446_vm0, %v2445_v1  ;;  %v2297_v21 = vld [vmem:[%s2906_s5] sm:$0xff] (!%p312_p10)   ;;  %v2298_v22 = vld [vmem:[%s2906_s5 + $0x8] sm:$0xff] (!%p312_p10)   ;;  %v2302_v42 = vld [vmem:[%s2904_s3 + $0x18] sm:$0xff] (!%p312_p10)   ;;  %s2639_s21 = sand.u32 (!%p312_p10), 1, %s2427_s28   ;;  %vm962_vm4 = vcmask (!%p312_p10), 1043456  }
  0x14   : > { %2051 = vmatprep.subr.bf16.mxu1 (!%p312_p10), %v2445_v1  ;;  %2069 = vmatprep.mubr.msk.bf16.mxu0 (!%p312_p10), %vm2446_vm0, %v2445_v1  ;;  %s1883_s22 = sshll.u32 (!%p312_p10), %s2639_s21, 5  ;;  %v2299_v46 = vld [vmem:[%s2905_s4 + $0x10] sm:$0xff] (!%p312_p10)   ;;  %v2300_v48 = vld [vmem:[%s2905_s4 + $0x18] sm:$0xff] (!%p312_p10)  }
  0x15   : > { %2066 = vmatpush3.bf16.msra.mxu0 (!%p312_p10), %v2297_v21  ;;  %s2645_s26 = scalar_lea.vmem (!%p312_p10), [#allocation4], %s1883_s22  ;;  %v2303_v0 = vld [vmem:[%s2906_s5 + $0x10] sm:$0xff] (!%p312_p10)  }
  0x16   : > { %2067 = vmatprep.subr.bf16.mxu0 (!%p312_p10), %v2445_v1 }
  0x17   : > { %2052 = vmatpush3.bf16.msra.mxu1 (!%p312_p10), %v2294_v2  ;;  %v2304_v2 = vld [vmem:[%s2906_s5 + $0x18] sm:$0xff] (!%p312_p10)  }
  0x18   : > { %2057 = vmatprep.subr.bf16.mxu1 (!%p312_p10), %v2445_v1 }
  0x19   : > { %s2566_s23 = scalar_select %p362_p11, %s2435_s30, 1  ;;  %2068 = vmatpush3.bf16.msra.mxu0 %v2298_v22 }
  0x1a   : > { %2079 = vmatprep.subr.bf16.mxu0 %v2445_v1 }
  0x1b   : > { %s1884_s24 = sshll.u32 %s2566_s23, 3  ;;  %s1986_s25 = sshll.u32 %s2566_s23, 4 }
  0x1c   : > { %s368_s12 = scalar_lea.vmem %s2901_s0, %s1884_s24  ;;  %s373_s19 = scalar_lea.vmem %s2902_s1, %s1986_s25 }
  0x1d   : > { %v380_v3 = vld [vmem:[%s368_s12] sm:$0xff]  ;;  %v383_v8 = vld [vmem:[%s373_s19 + $0x8] sm:$0xff]  ;;  %s378_s12 = scalar_lea.vmem %s2903_s2, %s1986_s25  ;;  %s1745_s25 = sshll.u32 %s2645_s26, 4  ;;  %s2815_s25 = int_to_ptr.vmem [resolvable:$true] %s1745_s25 }
  0x1e   : > { %v2582_v5 = vpack.c.bf16 %v380_v3, %v380_v3  ;;  %v382_v7 = vld [vmem:[%s373_s19] sm:$0xff]  ;;  %v386_v24 = vld [vmem:[%s378_s12 + $0x8] sm:$0xff]  ;;  %s1988_s19 = sshll.u32 %s2435_s30, 9  ;;  %s1717_s24 = scalar_lea.sflag [#allocation5], %s2639_s21 }
  0x1f   : > { %v2592_v9 = vpack.c.bf16 %v383_v8, %v382_v7  ;;  %v385_v23 = vld [vmem:[%s378_s12] sm:$0xff]  ;;  %s2821_s13 = scalar_lea.hbm %s2909_s8, %s1988_s19  ;;  %s2333_s11 = scalar_lea.vmem %s2815_s25, 512 }
  0x20   : > { %2054 = vmatmul.mubr.msk.bf16.vlgmr.msra.gmra.mrb[0].mxu1 %vm404_vm1, %v2582_v5  ;;  %v2616_v25 = vpack.c.bf16 %v386_v24, %v385_v23  ;;  %v2305_v23 = vld [vmem:[%s2904_s3 + $0x20] sm:$0xff]   ;;  %p2334_p12 = scmp.ne.s32.totalorder %s2815_s25, %s2333_s11  ;;  %s2447_s12 = smov [#allocation4]  }
  0x21   : > { %2058 = vmatpush3.bf16.msra.mxu1 %v2295_v4  ;;  %2061 = vmatprep.mubr.msk.bf16.mxu1 %vm2446_vm0, %v2445_v1  ;;  %s2337_s14 = sshll.u32 %s2447_s12, 4  ;;  %s2338_s14 = int_to_ptr.vmem [resolvable:$false] %s2337_s14 }
  0x22   : > { %2059 = vmatprep.subr.bf16.mxu1 %v2445_v1  ;;  %2070 = vmatmul.mubr.msk.bf16.vlgmr.msra.gmra.mrb[0].mxu0 %vm404_vm1, %v2616_v25  ;;  %p2335_p13 = pnand %p2334_p12, %p2536_p4  ;;  %p2340_p1 = scmp.lt.s32.totalorder %s2815_s25, %s2338_s14 }
  0x23   : > { %2081 = vmatprep.mubr.msk.bf16.mxu0 %vm2446_vm0, %v2445_v1 }
  0x24   : > { %p2336_p0 = pneg %p2335_p13 }
  0x25   : > { %2060 = vmatpush3.bf16.msra.mxu1 %v2296_v6 }
  0x26   : > { %2073 = vmatprep.subr.bf16.mxu1 %v2445_v1 }
  0x28   : > { %2062 = vmatmul.mubr.msk.bf16.vlgmr.msra.gmra.mrb[4].mxu1 %vm404_vm1, %v2592_v9 }
  0x29   : > { %2075 = vmatprep.mubr.msk.bf16.mxu1 %vm2446_vm0, %v2445_v1 }
  0xf3   : > { %v442_v10 = vpop.f32.mrb[0].mxu1 }
  0xf4   : > { %v2055_v11 = vpop.f32.mrb[1].mxu1  ;;  %v568_v20 = vpack.c.bf16 %v442_v10, %v442_v10 }
  0xf5   : > { %v445_v12 = vpop.f32.mrb[2].mxu1  ;;  %v561_v36 = vpop.f32.mrb[0].mxu0 }
  0xf6   : > { %v2056_v13 = vpop.f32.mrb[3].mxu1  ;;  %v2071_v37 = vpop.f32.mrb[1].mxu0 }
  0xf7   : > { %v564_v38 = vpop.f32.mrb[2].mxu0 }
  0xf8   : > { %v2072_v39 = vpop.f32.mrb[3].mxu0  ;;  %v631_v40 = vpack.c.bf16 %v564_v38, %v561_v36 }
  0xfa   : > { %2080 = vmatpush3.bf16.msra.mxu0 %v631_v40 }
  0xfb   : > { %v501_v14 = vpop.f32.mrb[4].mxu1  ;;  %2093 = vmatprep.subr.bf16.mxu0 %v2445_v1 }
  0xfc   : > { %v2063_v15 = vpop.f32.mrb[5].mxu1 }
  0xfd   : > { %v504_v16 = vpop.f32.mrb[6].mxu1 }
  0xfe   : > { %v569_v17 = vpack.c.bf16 %v504_v16, %v501_v14  ;;  %v2064_v18 = vpop.f32.mrb[7].mxu1 }
 0x100   : > { %v575_v19 = vsel %vm570_vm2, %v569_v17, 0 }
 0x101   : > { %2074 = vmatpush3.bf16.xpose.msra.mxu1 %v575_v19 }
 0x102   : > { %2085 = vmatprep.subr.bf16.mxu1 %v2445_v1 }
 0x108   : > { %2076 = vmatmul.mubr.msk.bf16.vlgmr.msra.gmra.mrb[8].mxu1 %vm570_vm2, %v568_v20 }
 0x109   : > { %2089 = vmatprep.mubr.msk.bf16.mxu1 %vm2446_vm0, %v2445_v1  ;;  %2086 = vmatpush3.bf16.msra.mxu1 %v2301_v41 }
 0x10a   : > { %2087 = vmatprep.subr.bf16.mxu1 %v2445_v1 }
 0x10d   : > { %2088 = vmatpush3.bf16.msra.mxu1 %v2302_v42 }
 0x10e   : > { %2101 = vmatprep.subr.bf16.mxu1 %v2445_v1 }
 0x110   : > { %2090 = vmatmul.mubr.msk.bf16.vlgmr.msra.gmra.mrb[12].mxu1 %vm404_vm1, %v2582_v5 }
 0x111   : > { %2105 = vmatprep.mubr.msk.bf16.mxu1 %vm2446_vm0, %v2445_v1  ;;  %2102 = vmatpush3.bf16.msra.mxu1 %v2303_v0 }
 0x112   : > { %2103 = vmatprep.subr.bf16.mxu1 %v2445_v1 }
 0x115   : > { %2104 = vmatpush3.bf16.msra.mxu1 %v2304_v2 }
 0x116   : > { %2115 = vmatprep.subr.bf16.mxu1 %v2445_v1 }
 0x118   : > { %2106 = vmatmul.mubr.msk.bf16.vlgmr.msra.gmra.mrb[16].mxu1 %vm404_vm1, %v2616_v25 }
 0x119   : > { %2117 = vmatprep.mubr.msk.bf16.mxu1 %vm2446_vm0, %v2445_v1 }
 0x1db   : > { %v611_v26 = vpop.f32.mrb[8].mxu1 }
 0x1dc   : > { %v2077_v27 = vpop.f32.mrb[9].mxu1  ;;  %v618_v28 = vsel %vm617_vm3, %v611_v26, -inf }
 0x1dd   : > { %619 = vmax.xlane.f32.xlu0 %v618_v28  ;;  %v614_v29 = vpop.f32.mrb[10].mxu1  ;;  %v2307_v27 = vld [vmem:[%s2905_s4 + $0x20] sm:$0xff]   ;;  %v2308_v28 = vld [vmem:[%s2905_s4 + $0x28] sm:$0xff]  }
 0x1de   : > { %v2078_v30 = vpop.f32.mrb[11].mxu1  ;;  %v1924_v29 = vld [vmem:[%s2907_s6 + $0x4] sm:$0xf] }
 0x1df   : > { %v964_v30 = vsel %vm962_vm4, %v1924_v29, 0 }
 0x1e3   : > { %v728_v49 = vpop.f32.mrb[12].mxu1 }
 0x1e4   : > { %v2091_v50 = vpop.f32.mrb[13].mxu1  ;;  %v850_v63 = vpack.c.bf16 %v728_v49, %v728_v49  ;;  %v2309_v49 = vld [vmem:[%s2904_s3 + $0x30] sm:$0xff]  }
 0x1e5   : > { %v731_v51 = vpop.f32.mrb[14].mxu1 }
 0x1e6   : > { %v2092_v52 = vpop.f32.mrb[15].mxu1  ;;  %v2310_v51 = vld [vmem:[%s2904_s3 + $0x38] sm:$0xff]  }
 0x1e7   : > { %v2311_v52 = vld [vmem:[%s2905_s4 + $0x30] sm:$0xff]  }
 0x1eb   : > { %v843_v15 = vpop.f32.mrb[16].mxu1 }
 0x1ec   : > { %v2107_v16 = vpop.f32.mrb[17].mxu1 }
 0x1ed   : > { %v846_v17 = vpop.f32.mrb[18].mxu1 }
 0x1ee   : > { %v2108_v18 = vpop.f32.mrb[19].mxu1  ;;  %v912_v19 = vpack.c.bf16 %v846_v17, %v843_v15 }
 0x1f0   : > { %2116 = vmatpush3.bf16.msra.mxu1 %v912_v19 }
 0x1f1   : > { %2133 = vmatprep.subr.bf16.mxu1 %v2445_v1 }
 0x26a   : > { %v620_v31 = vpop.xlane.xlu0 %619 }
 0x26b   : > { %v621_v32 = vsub.f32 %v611_v26, %v620_v31  ;;  %v2306_v26 = vld [vmem:[%s2904_s3 + $0x28] sm:$0xff]   ;;  %v676_v31 = vld [vmem:[%s2907_s6] sm:$0xf] }
 0x26d   : > { %v622_v33 = vmul.f32 1.442695, %v621_v32 }
 0x26f   : > { %2317 = vpow2.f32 %v622_v33 }
 0x279   : > { %v2318_v34 = vpop.eup %2317 }
 0x27a   : > { %v624_v35 = vsel %vm617_vm3, %v2318_v34, 0.0 }
 0x27b   : > { %625 = vadd.xlane.f32.xlu0 %v624_v35  ;;  %v1010_v35 = vsel %vm962_vm4, %v676_v31, 0 }
 0x308   : > { %v626_v43 = vpop.xlane.xlu0 %625 }
 0x309   : > { %2319 = vrcp.f32 %v626_v43 }
 0x313   : > { %v2320_v44 = vpop.eup %2319 }
 0x314   : > { %v628_v45 = vmul.f32 %v2320_v44, %v2318_v34 }
 0x316   : > { %v630_v47 = vpack.c.bf16 %v628_v45, %v628_v45  ;;  %629 = vst.msk [vmem:[%s2645_s26] sm:$0xff] %vm617_vm3, %v628_v45 }
 0x318   : > { %2082 = vmatmul.mubr.msk.bf16.vlgmr.msra.gmra.mrb[4].mxu0 %vm617_vm3, %v630_v47 }
 0x319   : > { %2094 = vmatpush3.bf16.msra.mxu0 %v2299_v46  ;;  %2097 = vmatprep.mubr.msk.bf16.mxu0 %vm2446_vm0, %v2445_v1 }
 0x31a   : > { %2095 = vmatprep.subr.bf16.mxu0 %v2445_v1 }
 0x31d   : > { %2096 = vmatpush3.bf16.msra.mxu0 %v2300_v48 }
 0x31e   : > { %2109 = vmatprep.subr.bf16.mxu0 %v2445_v1 }
 0x320   : > { %2098 = vmatmul.mubr.msk.bf16.vlgmr.msra.gmra.mrb[8].mxu0 %vm404_vm1, %v2592_v9 }
 0x321   : > { %2111 = vmatprep.mubr.msk.bf16.mxu0 %vm2446_vm0, %v2445_v1 }
 0x3eb   : > { %v2661_v53 = vpop.f32.mrb[4].mxu0 }
 0x3ec   : > { %v2083_v54 = vpop.f32.mrb[5].mxu0  ;;  %v675_v42 = vpack.c.bf16 %v2661_v53, %v2661_v53  ;;  %v2312_v53 = vld [vmem:[%s2905_s4 + $0x38] sm:$0xff]  }
 0x3ed   : > { %v672_v55 = vpop.f32.mrb[6].mxu0  ;;  %v2314_v54 = vld [vmem:[%s2906_s5 + $0x28] sm:$0xff]  }
 0x3ee   : > { %v2084_v56 = vpop.f32.mrb[7].mxu0 }
 0x3f3   : > { %v785_v57 = vpop.f32.mrb[8].mxu0 }
 0x3f4   : > { %v2099_v58 = vpop.f32.mrb[9].mxu0 }
 0x3f5   : > { %v788_v59 = vpop.f32.mrb[10].mxu0 }
 0x3f6   : > { %v851_v60 = vpack.c.bf16 %v788_v59, %v785_v57  ;;  %v2100_v61 = vpop.f32.mrb[11].mxu0 }
 0x3f8   : > { %v856_v62 = vsel %vm570_vm2, %v851_v60, 0 }
 0x3f9   : > { %2110 = vmatpush3.bf16.xpose.msra.mxu0 %v856_v62 }
 0x3fa   : > { %2121 = vmatprep.subr.bf16.mxu0 %v2445_v1 }
 0x400   : > { %2112 = vmatmul.mubr.msk.bf16.vlgmr.msra.gmra.mrb[12].mxu0 %vm570_vm2, %v850_v63 }
 0x401   : > { %2123 = vmatprep.mubr.msk.bf16.mxu0 %vm2446_vm0, %v2445_v1  ;;  %2122 = vmatpush3.bf16.msra.mxu0 %v964_v30 }
 0x402   : > { %2127 = vmatprep.subr.bf16.mxu0 %v2445_v1 }
 0x4d3   : > { %v892_v3 = vpop.f32.mrb[12].mxu0 }
 0x4d4   : > { %v2113_v4 = vpop.f32.mrb[13].mxu0  ;;  %v898_v6 = vsel %vm617_vm3, %v892_v3, -inf }
 0x4d5   : > { %899 = vmax.xlane.f32.xlu1 %v898_v6  ;;  %v895_v7 = vpop.f32.mrb[14].mxu0 }
 0x4d6   : > { %v2114_v8 = vpop.f32.mrb[15].mxu0 }
 0x562   : > { %v900_v10 = vpop.xlane.xlu1 %899 }
 0x563   : > { %v901_v11 = vsub.f32 %v892_v3, %v900_v10 }
 0x565   : > { %v902_v12 = vmul.f32 1.442695, %v901_v11 }
 0x567   : > { %2321 = vpow2.f32 %v902_v12 }
 0x571   : > { %v2322_v13 = vpop.eup %2321 }
 0x572   : > { %v904_v14 = vsel %vm617_vm3, %v2322_v13, 0.0 }
 0x573   : > { %905 = vadd.xlane.f32.xlu1 %v904_v14 }
 0x600   : > { %v906_v20 = vpop.xlane.xlu1 %905 }
 0x601   : > { %2323 = vrcp.f32 %v906_v20 }
 0x60b   : > { %v2324_v21 = vpop.eup %2323 }
 0x60c   : > { %v908_v22 = vmul.f32 %v2324_v21, %v2322_v13 }
 0x60e   : > { %v911_v24 = vpack.c.bf16 %v908_v22, %v908_v22  ;;  %1922 = vst.msk [vmem:[%s2645_s26 + $0x8] sm:$0xff] %vm617_vm3, %v908_v22 }
 0x610   : > { %2118 = vmatmul.mubr.msk.bf16.vlgmr.msra.gmra.mrb[20].mxu1 %vm617_vm3, %v911_v24 }
 0x611   : > { %2134 = vmatpush3.bf16.msra.mxu1 %v2305_v23  ;;  %2137 = vmatprep.mubr.msk.bf16.mxu1 %vm2446_vm0, %v2445_v1 }
 0x612   : > { %2135 = vmatprep.subr.bf16.mxu1 %v2445_v1 }
 0x615   : > { %2136 = vmatpush3.bf16.msra.mxu1 %v2306_v26 }
 0x616   : > { %2141 = vmatprep.subr.bf16.mxu1 %v2445_v1 }
 0x618   : > { %2138 = vmatmul.mubr.msk.bf16.vlgmr.msra.gmra.mrb[24].mxu1 %vm404_vm1, %v2582_v5 }
 0x619   : > { %2142 = vmatpush3.bf16.msra.mxu1 %v2307_v27  ;;  %2145 = vmatprep.mubr.msk.bf16.mxu1 %vm2446_vm0, %v2445_v1 }
 0x61a   : > { %2143 = vmatprep.subr.bf16.mxu1 %v2445_v1 }
 0x61d   : > { %2144 = vmatpush3.bf16.msra.mxu1 %v2308_v28 }
 0x61e   : > { %2157 = vmatprep.subr.bf16.mxu1 %v2445_v1 }
 0x620   : > { %2146 = vmatmul.mubr.msk.bf16.vlgmr.msra.gmra.mrb[28].mxu1 %vm404_vm1, %v2592_v9 }
 0x621   : > { %2159 = vmatprep.mubr.msk.bf16.mxu1 %vm2446_vm0, %v2445_v1 }
 0x6e3   : > { %v950_v32 = vpop.f32.mrb[20].mxu1 }
 0x6e4   : > { %v956_v33 = vpack.c.bf16 %v950_v32, %v950_v32  ;;  %v2119_v34 = vpop.f32.mrb[21].mxu1 }
 0x6e5   : > { %v953_v36 = vpop.f32.mrb[22].mxu1 }
 0x6e6   : > { %v2120_v37 = vpop.f32.mrb[23].mxu1  ;;  %2124 = vmatmul.mubr.msk.bf16.vlgmr.msra.gmra.mrb[16].mxu0 %vm570_vm2, %v956_v33  ;;  %v1951_v33 = vld [vmem:[%s2907_s6 + $0x8] sm:$0xf] }
 0x6e7   : > { %2128 = vmatpush3.bf16.msra.mxu0 %v1010_v35  ;;  %2129 = vmatprep.mubr.msk.bf16.mxu0 %vm2446_vm0, %v2445_v1  ;;  %v1338_v35 = vsel %vm962_vm4, %v1951_v33, 0  ;;  %v2315_v37 = vld [vmem:[%s2906_s5 + $0x30] sm:$0xff]  }
 0x6e8   : > { %2149 = vmatprep.subr.bf16.mxu0 %v2445_v1 }
 0x6eb   : > { %v1103_v38 = vpop.f32.mrb[24].mxu1 }
 0x6ec   : > { %v2139_v39 = vpop.f32.mrb[25].mxu1  ;;  %v1225_v50 = vpack.c.bf16 %v1103_v38, %v1103_v38 }
 0x6ed   : > { %v1106_v40 = vpop.f32.mrb[26].mxu1 }
 0x6ee   : > { %v2140_v41 = vpop.f32.mrb[27].mxu1 }
 0x6f2   : > { %2130 = vmatmul.mubr.msk.bf16.vlgmr.msra.gmra.mrb[16].mxu0 %vm570_vm2, %v675_v42  ;;  %v2316_v42 = vld [vmem:[%s2906_s5 + $0x38] sm:$0xff]  }
 0x6f3   : > { %v1160_v43 = vpop.f32.mrb[28].mxu1  ;;  %2153 = vmatprep.mubr.msk.bf16.mxu0 %vm2446_vm0, %v2445_v1 }
 0x6f4   : > { %v2147_v44 = vpop.f32.mrb[29].mxu1 }
 0x6f5   : > { %v1163_v45 = vpop.f32.mrb[30].mxu1 }
 0x6f6   : > { %v1226_v46 = vpack.c.bf16 %v1163_v45, %v1160_v43  ;;  %v2148_v47 = vpop.f32.mrb[31].mxu1 }
 0x6f8   : > { %v1231_v48 = vsel %vm570_vm2, %v1226_v46, 0 }
 0x6f9   : > { %2158 = vmatpush3.bf16.xpose.msra.mxu1 %v1231_v48 }
 0x6fa   : > { %2175 = vmatprep.subr.bf16.mxu1 %v2445_v1 }
 0x700   : > { %2160 = vmatmul.mubr.msk.bf16.vlgmr.msra.gmra.mrb[32].mxu1 %vm570_vm2, %v1225_v50 }
 0x701   : > { %2176 = vmatpush3.bf16.msra.mxu1 %v2309_v49  ;;  %2179 = vmatprep.mubr.msk.bf16.mxu1 %vm2446_vm0, %v2445_v1 }
 0x702   : > { %2177 = vmatprep.subr.bf16.mxu1 %v2445_v1 }
 0x705   : > { %2178 = vmatpush3.bf16.msra.mxu1 %v2310_v51 }
 0x706   : > { %2183 = vmatprep.subr.bf16.mxu1 %v2445_v1 }
 0x708   : > { %2180 = vmatmul.mubr.msk.bf16.vlgmr.msra.gmra.mrb[36].mxu1 %vm404_vm1, %v2582_v5  ;;  %v2313_v5 = vld [vmem:[%s2906_s5 + $0x20] sm:$0xff]  }
 0x709   : > { %2184 = vmatpush3.bf16.msra.mxu1 %v2311_v52  ;;  %2187 = vmatprep.mubr.msk.bf16.mxu1 %vm2446_vm0, %v2445_v1 }
 0x70a   : > { %2185 = vmatprep.subr.bf16.mxu1 %v2445_v1  ;;  %2150 = vmatpush3.bf16.msra.mxu0 %v2313_v5 }
 0x70b   : > { %2151 = vmatprep.subr.bf16.mxu0 %v2445_v1 }
 0x70d   : > { %2186 = vmatpush3.bf16.msra.mxu1 %v2312_v53 }
 0x70e   : > { %2199 = vmatprep.subr.bf16.mxu1 %v2445_v1  ;;  %2152 = vmatpush3.bf16.msra.mxu0 %v2314_v54 }
 0x70f   : > { %2163 = vmatprep.subr.bf16.mxu0 %v2445_v1 }
 0x710   : > { %2188 = vmatmul.mubr.msk.bf16.vlgmr.msra.gmra.mrb[40].mxu1 %vm404_vm1, %v2592_v9 }
 0x711   : > { %2201 = vmatprep.mubr.msk.bf16.mxu1 %vm2446_vm0, %v2445_v1  ;;  %2154 = vmatmul.mubr.msk.bf16.vlgmr.msra.gmra.mrb[20].mxu0 %vm404_vm1, %v2616_v25 }
 0x712   : > { %2165 = vmatprep.mubr.msk.bf16.mxu0 %vm2446_vm0, %v2445_v1 }
 0x7d3   : > { %v1267_v9 = vpop.f32.mrb[32].mxu1 }
 0x7d4   : > { %v2161_v55 = vpop.f32.mrb[33].mxu1  ;;  %v1273_v56 = vsel %vm617_vm3, %v1267_v9, -inf }
 0x7d5   : > { %1274 = vmax.xlane.f32.xlu0 %v1273_v56  ;;  %v1270_v57 = vpop.f32.mrb[34].mxu1 }
 0x7d6   : > { %v2162_v58 = vpop.f32.mrb[35].mxu1 }
 0x7db   : > { %v1432_v59 = vpop.f32.mrb[36].mxu1 }
 0x7dc   : > { %v2181_v60 = vpop.f32.mrb[37].mxu1  ;;  %v1554_v7 = vpack.c.bf16 %v1432_v59, %v1432_v59 }
 0x7dd   : > { %v1435_v61 = vpop.f32.mrb[38].mxu1 }
 0x7de   : > { %v2182_v62 = vpop.f32.mrb[39].mxu1 }
 0x7e3   : > { %v1489_v63 = vpop.f32.mrb[40].mxu1 }
 0x7e4   : > { %v2189_v0 = vpop.f32.mrb[41].mxu1  ;;  %v1218_v14 = vpop.f32.mrb[20].mxu0 }
 0x7e5   : > { %v1492_v2 = vpop.f32.mrb[42].mxu1  ;;  %v2155_v15 = vpop.f32.mrb[21].mxu0 }
 0x7e6   : > { %v1555_v3 = vpack.c.bf16 %v1492_v2, %v1489_v63  ;;  %v2190_v4 = vpop.f32.mrb[43].mxu1  ;;  %v1221_v16 = vpop.f32.mrb[22].mxu0 }
 0x7e7   : > { %v2156_v17 = vpop.f32.mrb[23].mxu0  ;;  %v1287_v18 = vpack.c.bf16 %v1221_v16, %v1218_v14 }
 0x7e8   : > { %v1560_v6 = vsel %vm570_vm2, %v1555_v3, 0 }
 0x7e9   : > { %2200 = vmatpush3.bf16.xpose.msra.mxu1 %v1560_v6  ;;  %2164 = vmatpush3.bf16.msra.mxu0 %v1287_v18 }
 0x7ea   : > { %2169 = vmatprep.subr.bf16.mxu0 %v2445_v1 }
 0x7f0   : > { %2202 = vmatmul.mubr.msk.bf16.vlgmr.msra.gmra.mrb[44].mxu1 %vm570_vm2, %v1554_v7 }
 0x862   : > { %v1275_v8 = vpop.xlane.xlu0 %1274 }
 0x863   : > { %v1276_v10 = vsub.f32 %v1267_v9, %v1275_v8 }
 0x865   : > { %v1277_v11 = vmul.f32 1.442695, %v1276_v10 }
 0x867   : > { %2325 = vpow2.f32 %v1277_v11 }
 0x871   : > { %v2326_v12 = vpop.eup %2325 }
 0x872   : > { %v1279_v13 = vsel %vm617_vm3, %v2326_v12, 0.0 }
 0x873   : > { %1280 = vadd.xlane.f32.xlu1 %v1279_v13 }
 0x8c3   : > { %v1596_v19 = vpop.f32.mrb[44].mxu1 }
 0x8c4   : > { %v1602_v20 = vsel %vm617_vm3, %v1596_v19, -inf  ;;  %v2203_v21 = vpop.f32.mrb[45].mxu1 }
 0x8c5   : > { %1603 = vmax.xlane.f32.xlu0 %v1602_v20  ;;  %v1599_v22 = vpop.f32.mrb[46].mxu1 }
 0x8c6   : > { %v2204_v23 = vpop.f32.mrb[47].mxu1 }
 0x900   : > { %v1281_v24 = vpop.xlane.xlu1 %1280 }
 0x901   : > { %2327 = vrcp.f32 %v1281_v24 }
 0x90b   : > { %v2328_v26 = vpop.eup %2327 }
 0x90c   : > { %v1283_v27 = vmul.f32 %v2328_v26, %v2326_v12 }
 0x90e   : > { %v1286_v28 = vpack.c.bf16 %v1283_v27, %v1283_v27  ;;  %1949 = vst.msk [vmem:[%s2645_s26 + $0x10] sm:$0xff] %vm617_vm3, %v1283_v27 }
 0x910   : > { %2166 = vmatmul.mubr.msk.bf16.vlgmr.msra.gmra.mrb[24].mxu0 %vm617_vm3, %v1286_v28 }
 0x911   : > { %2171 = vmatprep.mubr.msk.bf16.mxu0 %vm2446_vm0, %v2445_v1  ;;  %2170 = vmatpush3.bf16.msra.mxu0 %v1338_v35 }
 0x912   : > { %2191 = vmatprep.subr.bf16.mxu0 %v2445_v1 }
 0x952   : > { %v1604_v29 = vpop.xlane.xlu0 %1603 }
 0x953   : > { %v1605_v30 = vsub.f32 %v1596_v19, %v1604_v29 }
 0x955   : > { %v1606_v31 = vmul.f32 1.442695, %v1605_v30 }
 0x957   : > { %2329 = vpow2.f32 %v1606_v31 }
 0x961   : > { %v2330_v32 = vpop.eup %2329 }
 0x962   : > { %v1608_v34 = vsel %vm617_vm3, %v2330_v32, 0.0 }
 0x963   : > { %1609 = vadd.xlane.f32.xlu1 %v1608_v34 }
 0x9e3   : > { %v1325_v36 = vpop.f32.mrb[24].mxu0 }
 0x9e4   : > { %v1331_v38 = vpack.c.bf16 %v1325_v36, %v1325_v36  ;;  %v2167_v39 = vpop.f32.mrb[25].mxu0 }
 0x9e5   : > { %v1328_v40 = vpop.f32.mrb[26].mxu0 }
 0x9e6   : > { %v2168_v41 = vpop.f32.mrb[27].mxu0  ;;  %2172 = vmatmul.mubr.msk.bf16.vlgmr.msra.gmra.mrb[16].mxu0 %vm570_vm2, %v1331_v38 }
 0x9e7   : > { %2192 = vmatpush3.bf16.msra.mxu0 %v2315_v37  ;;  %2195 = vmatprep.mubr.msk.bf16.mxu0 %vm2446_vm0, %v2445_v1 }
 0x9e8   : > { %2193 = vmatprep.subr.bf16.mxu0 %v2445_v1 }
 0x9eb   : > { %2194 = vmatpush3.bf16.msra.mxu0 %v2316_v42 }
 0x9ec   : > { %2205 = vmatprep.subr.bf16.mxu0 %v2445_v1 }
 0x9ee   : > { %2196 = vmatmul.mubr.msk.bf16.vlgmr.msra.gmra.mrb[28].mxu0 %vm404_vm1, %v2616_v25  ;;  %v1977_v25 = vld [vmem:[%s2907_s6 + $0xc] sm:$0xf] }
 0x9ef   : > { %2207 = vmatprep.mubr.msk.bf16.mxu0 %vm2446_vm0, %v2445_v1  ;;  %v1667_v52 = vsel %vm962_vm4, %v1977_v25, 0 }
 0x9f0   : > { %v1610_v43 = vpop.xlane.xlu1 %1609 }
 0x9f1   : > { %2331 = vrcp.f32 %v1610_v43 }
 0x9fb   : > { %v2332_v44 = vpop.eup %2331 }
 0x9fc   : > { %v1612_v45 = vmul.f32 %v2332_v44, %v2330_v32 }
 0x9fe   : > { %1975 = vst.msk [vmem:[%s2645_s26 + $0x18] sm:$0xff] %vm617_vm3, %v1612_v45  ;;  %v1615_v51 = vpack.c.bf16 %v1612_v45, %v1612_v45  ;;  %s2339_s26 = scalar_lea.vmem %s2338_s14, 1024 }
 0x9ff   : > { %p2341_p2 = scmp.lt.s32.totalorder %s2339_s26, %s2333_s11 }
 0xa01   : > { %p2342_p3 = por %p2341_p2, %p2340_p1 }
 0xa03   : > { %p2343_p5 = pnand %p2342_p3, %p2336_p0 }
 0xac1   : > { %v1547_v46 = vpop.f32.mrb[28].mxu0 }
 0xac2   : > { %v2197_v47 = vpop.f32.mrb[29].mxu0 }
 0xac3   : > { %v1550_v48 = vpop.f32.mrb[30].mxu0 }
 0xac4   : > { %v1616_v49 = vpack.c.bf16 %v1550_v48, %v1547_v46  ;;  %v2198_v50 = vpop.f32.mrb[31].mxu0 }
 0xac6   : > { %2206 = vmatpush3.bf16.msra.mxu0 %v1616_v49 }
 0xac7   : > { %2211 = vmatprep.subr.bf16.mxu0 %v2445_v1 }
 0xac9   : > { %2208 = vmatmul.mubr.msk.bf16.vlgmr.msra.gmra.mrb[32].mxu0 %vm617_vm3, %v1615_v51 }
 0xaca   : > { %2213 = vmatprep.mubr.msk.bf16.mxu0 %vm2446_vm0, %v2445_v1  ;;  %2212 = vmatpush3.bf16.msra.mxu0 %v1667_v52 }
 0xb9c   : > { %v1654_v53 = vpop.f32.mrb[32].mxu0 }
 0xb9d   : > { %v1660_v5 = vpack.c.bf16 %v1654_v53, %v1654_v53  ;;  %v2209_v54 = vpop.f32.mrb[33].mxu0 }
 0xb9e   : > { %v1657_v9 = vpop.f32.mrb[34].mxu0 }
 0xb9f   : > { %v2210_v55 = vpop.f32.mrb[35].mxu0  ;;  %2214 = vmatmul.mubr.msk.bf16.vlgmr.msra.gmra.mrb[16].mxu0 %vm570_vm2, %v1660_v5 }
 0xba0   : > { %2346 = shalt.err (!%p2343_p5)
}
 0xba1   : > { %s2347_s16 = scalar_lea.hbm %s2821_s13, 512  ;;  %s2351_s20 = scalar_lea.hbm %s2909_s8, 1024 }
 0xba2   : > { %p2348_p6 = scmp.ne.s32.totalorder %s2821_s13, %s2347_s16  ;;  %p2352_p10 = scmp.lt.u32.totalorder %s2821_s13, %s2909_s8 }
 0xba3   : > { %p2353_p11 = scmp.lt.u32.totalorder %s2351_s20, %s2347_s16  ;;  %p2355_p13 = scmp.lt.u32.totalorder %s2347_s16, %s2821_s13 }
 0xba4   : > { %p2349_p7 = pnand %p2348_p6, %p2536_p4 }
 0xba5   : > { %p2354_p12 = por %p2353_p11, %p2352_p10 }
 0xba6   : > { %p2350_p9 = pneg %p2349_p7 }
 0xba7   : > { %p2356_p0 = por %p2355_p13, %p2354_p12 }
 0xba9   : > { %p2357_p1 = pnand %p2356_p0, %p2350_p9 }
 0xbab   : > { %2360 = shalt.err (!%p2357_p1)
}
 0xbac   : > { %s2448_s11 = smov 128   ;;  %s2449_s14 = smov 8  }
 0xbad   : > { %2230 = dma.vmem_to_hbm [thread:$0]  (%p2536_p4), %s2815_s25, 512, %s2821_s13, %s1717_s24, %s2448_s11, %s2448_s11, %s2449_s14  }
 0xbae   : > { %s1882_s26 = sshll.u32 %s2639_s21, 3  ;;  %s1981_s23 = sshll.u32 %s2435_s30, 7 }
 0xbaf   : > { %s354_s19 = scalar_lea.vmem [#allocation2], %s1882_s26  ;;  %s2852_s12 = scalar_lea.hbm %s2908_s7, %s1981_s23 }
 0xbb0   : > { %s1731_s16 = sshll.u32 %s354_s19, 4  ;;  %s1712_s25 = scalar_lea.sflag [#allocation3], %s2639_s21  ;;  %s2854_s16 = int_to_ptr.vmem [resolvable:$true] %s1731_s16 }
 0xbb1   : > { %s2361_s13 = scalar_lea.vmem %s2854_s16, 128  ;;  %s2450_s30 = smov [#allocation2]  }
 0xbb2   : > { %p2362_p2 = scmp.ne.s32.totalorder %s2854_s16, %s2361_s13  ;;  %s2365_s24 = sshll.u32 %s2450_s30, 4  ;;  %s2366_s24 = int_to_ptr.vmem [resolvable:$false] %s2365_s24 }
 0xbb3   : > { %s2367_s11 = scalar_lea.vmem %s2366_s24, 256  ;;  %p2368_p6 = scmp.lt.s32.totalorder %s2854_s16, %s2366_s24 }
 0xbb4   : > { %p2363_p3 = pnand %p2362_p2, %p2536_p4  ;;  %p2369_p7 = scmp.lt.s32.totalorder %s2367_s11, %s2361_s13 }
 0xbb6   : > { %p2364_p5 = pneg %p2363_p3  ;;  %p2370_p9 = por %p2369_p7, %p2368_p6 }
 0xbb8   : > { %p2371_p10 = pnand %p2370_p9, %p2364_p5 }
 0xc72   : > { %v1703_v1 = vpop.f32.mrb[16].mxu0 }
 0xc73   : > { %1710 = vst.msk [vmem:[%s354_s19] sm:$0xff] %vm404_vm1, %v1703_v1  ;;  %v2215_v56 = vpop.f32.mrb[17].mxu0 }
 0xc74   : > { %v1706_v57 = vpop.f32.mrb[18].mxu0 }
 0xc75   : > { %2374 = shalt.err (!%p2371_p10)
}
 0xc76   : > { %s2375_s21 = scalar_lea.hbm %s2852_s12, 128  ;;  %s2379_s23 = scalar_lea.hbm %s2908_s7, 256 }
 0xc77   : > { %p2376_p11 = scmp.ne.s32.totalorder %s2852_s12, %s2375_s21  ;;  %p2380_p0 = scmp.lt.u32.totalorder %s2852_s12, %s2908_s7 }
 0xc78   : > { %p2381_p1 = scmp.lt.u32.totalorder %s2379_s23, %s2375_s21  ;;  %p2383_p3 = scmp.lt.u32.totalorder %s2375_s21, %s2852_s12 }
 0xc79   : > { %p2377_p12 = pnand %p2376_p11, %p2536_p4 }
 0xc7a   : > { %p2382_p2 = por %p2381_p1, %p2380_p0 }
 0xc7b   : > { %p2378_p13 = pneg %p2377_p12 }
 0xc7c   : > { %p2384_p5 = por %p2383_p3, %p2382_p2 }
 0xc7e   : > { %p2385_p6 = pnand %p2384_p5, %p2378_p13 }
 0xc80   : > { %2388 = shalt.err (!%p2385_p6)
}
 0xc81   : > { %2229 = dma.vmem_to_hbm [thread:$0]  (%p2536_p4), %s2854_s16, 128, %s2852_s12, %s1712_s25   ;;  %v2216_v58 = vpop.f32.mrb[19].mxu0 }
 0xc82 PF: > { %p2240_p7 = scmp.ge.s32.totalorder %s2443_s10, 2  ;;  %s1760_s22 = sand.u32 1, %s2423_s27  }
 0xc83   : > { %s1761_s13 = scalar_lea.sflag [#allocation3], %s1760_s22 }
 0xc84   : > { %p2234_p9 = pnand %p2240_p7, %p2543_p8 }
 0xc86   : > { %2414 = dma.done.wait (!%p2234_p9), %s1761_s13, 128  }
 0xc87   : > { %2416 = vsyncadd (!%p2234_p9), %s1761_s13, 4294967168  ;;  %s1770_s30 = scalar_lea.sflag [#allocation5], %s1760_s22 }
 0xc88   : > { %2418 = dma.done.wait (!%p2234_p9), %s1770_s30, 512  }
 0xc89   : > { %2420 = vsyncadd (!%p2234_p9), %s1770_s30, 4294966784  ;;  %s25_s10 = sadd.s32 1, %s2443_s10   ;;  %s2914_s15 = sld [smem:[#allocation8_spill]] }
 0xc8a   : > { %p22_p10 = scmp.ge.s32.totalorder %s25_s10, 4   ;;  %s2915_s27 = smov %s2427_s28 }
 0xc8b   : > { %s2916_s28 = smov %s2431_s29  ;;  %s2917_s29 = smov %s2549_s18 }
 0xc8c   : > { %s2918_s30 = smov %s2439_s9  ;;  %24 = sbr.rel (!%p22_p10) target bundleno = 6 (0x6), region = 121 }
 0xc8f   : > { %s2919_s9 = smov %s2914_s15 }
 0xc93   :  { %1775 = vsyncpa [#allocation3], 1 }
 0xc94   :  { %1777 = vsyncpa [#allocation3 + $0x1], 1 }
 0xc95   :  { %1778 = vsyncpa [#allocation5], 1 }
 0xc96   :  { %1780 = vsyncpa [#allocation5 + $0x1], 1 }

</bundles_post_ra>
